<compile_context>
chip_gen: v6e
topology: v6e:2x2x1
jax: 0.10.0
libtpu: 0.0.40
codegen_flags: <defaults>
</compile_context>

<pallas_src>
import jax
import jax.numpy as jnp
from jax import lax
from jax.experimental import pallas as pl
from jax.experimental.pallas import tpu as pltpu


def _pick_tile(dim: int, target: int, align: int) -> int:
    """Largest multiple of `align` that divides `dim` and is <= target, else full dim."""
    if dim <= target:
        return dim
    t = (target // align) * align
    while t >= align:
        if dim % t == 0:
            return t
        t -= align
    return dim


def _gemv_kernel(x_ref, w_ref, b_ref, o_ref, acc_ref):
    # x_ref:   (B_TILE, TK)  current x tile
    # w_ref:   (1, TK)       aggregated-weight tile (sum over out_features, hoisted)
    # b_ref:   (1,) in SMEM  aggregated bias (scalar)
    # o_ref:   (1, B_TILE)   lane-dense output tile
    # acc_ref: (1, B_TILE)   f32 running dot accumulator (VMEM scratch)
    k = pl.program_id(1)

    @pl.when(k == 0)
    def _init():
        acc_ref[...] = jnp.zeros_like(acc_ref)

    # Contract the IN tile of aggr_w against the IN tile of x; the batch dimension
    # lands on the lane axis of the result -> (1, B_TILE), f32 accumulation on MXU.
    partial = lax.dot_general(
        w_ref[...], x_ref[...],
        dimension_numbers=(((1,), (1,)), ((), ())),
        preferred_element_type=jnp.float32,
    )
    acc_ref[...] += partial

    @pl.when(k == pl.num_programs(1) - 1)
    def _finalize():
        o_ref[...] = (acc_ref[...] + b_ref[0]).astype(o_ref.dtype)


def fused_forward(x, weight, bias, *, b_tile_target=512, k_tile_target=1024):
    B, IN = x.shape
    OUT, IN_w = weight.shape
    assert IN == IN_w

    # Hoist the out_features reductions (one-time XLA reduce; removes OUT*IN HBM
    # traffic and the per-step sublane reduction from the kernel inner loop).
    aggr_w = jnp.sum(weight.astype(jnp.float32), axis=0, keepdims=True).astype(x.dtype)  # (1, IN)
    aggr_b = jnp.sum(bias.astype(jnp.float32)).reshape(1)                                # (1,) f32

    # Tile selection: lane dim (IN) aligned to 128, batch tile aligned to 128 so it is
    # valid both as the sublane dim of x blocks and the lane dim of the output block.
    TK = _pick_tile(IN, k_tile_target, 128)
    B_TILE = _pick_tile(B, b_tile_target, 128)
    grid = (B // B_TILE, IN // TK)  # reduction axis (IN) innermost

    itemsize = jnp.dtype(x.dtype).itemsize
    # Double-buffered input tiles + output block + f32 accumulator, with headroom.
    vmem_need = 2 * (B_TILE * TK + TK) * itemsize + 2 * B_TILE * itemsize + 4 * B_TILE
    vmem_limit = int(min(100 * 1024 * 1024, max(32 * 1024 * 1024, 4 * vmem_need)))

    out_lane_dense = pl.pallas_call(
        _gemv_kernel,
        out_shape=jax.ShapeDtypeStruct((1, B), x.dtype),
        grid_spec=pltpu.PrefetchScalarGridSpec(
            num_scalar_prefetch=0,
            grid=grid,
            in_specs=[
                pl.BlockSpec((B_TILE, TK), lambda b, k: (b, k)),          # x
                pl.BlockSpec((1, TK), lambda b, k: (0, k)),               # aggr_w
                pl.BlockSpec(memory_space=pltpu.MemorySpace.SMEM),        # aggr_b scalar
            ],
            out_specs=pl.BlockSpec((1, B_TILE), lambda b, k: (0, b)),     # lane-dense output
            scratch_shapes=[pltpu.VMEM((1, B_TILE), jnp.float32)],
        ),
        compiler_params=pltpu.CompilerParams(
            dimension_semantics=("parallel", "arbitrary"),
            vmem_limit_bytes=vmem_limit,
        ),
    )(x, aggr_w, aggr_b)

    # (1, B) -> (B, 1) to match the PyTorch module's output shape.
    return out_lane_dense.reshape(B, 1)


def reference_forward(x, weight, bias):
    # linear -> sum(dim=1) -> max -> mean -> logsumexp -> logsumexp over size-1 axes
    # collapses to sum_i (x @ W[i] + b[i]).
    y = x @ weight.T + bias                 # (B, OUT)
    return jnp.sum(y, axis=1, keepdims=True)  # (B, 1)


if __name__ == "__main__":
    batch_size = 8
    in_features = 32
    out_features = 16

    key = jax.random.PRNGKey(0)
    kx, kw, kb = jax.random.split(key, 3)

    # Deterministic init mimicking nn.Linear's uniform(-1/sqrt(in), 1/sqrt(in)).
    bound = 1.0 / jnp.sqrt(jnp.float32(in_features))
    weight = jax.random.uniform(kw, (out_features, in_features),
                                minval=-bound, maxval=bound, dtype=jnp.float32)
    bias = jax.random.uniform(kb, (out_features,),
                              minval=-bound, maxval=bound, dtype=jnp.float32)
    x = jax.random.normal(kx, (batch_size, in_features), dtype=jnp.float32)

    out = fused_forward(x, weight, bias)
    out = jax.block_until_ready(out)

    ref = reference_forward(x, weight, bias)
    assert out.shape == (batch_size, 1), out.shape
    assert jnp.allclose(out, ref, atol=1e-4, rtol=1e-4), (out, ref)

    print("KERNEL_OK")
</pallas_src>

<mosaic_0001>
module attributes {stable_mosaic.version = 11 : i64} {
  func.func @_gemv_kernel(%arg0: i32, %arg1: i32, %arg2: memref<8x32xf32, #tpu.memory_space<vmem>>, %arg3: memref<1x32xf32, #tpu.memory_space<vmem>>, %arg4: memref<1xf32, #tpu.memory_space<smem>>, %arg5: memref<1x8xf32, #tpu.memory_space<vmem>>, %arg6: memref<1x8xf32, #tpu.memory_space<vmem>>) attributes {dimension_semantics = [#tpu.dimension_semantics<parallel>, #tpu.dimension_semantics<arbitrary>], iteration_bounds = array<i64: 1, 1>, scalar_prefetch = 0 : i64, scratch_operands = 1 : i64, tpu.core_type = #tpu.core_type<tc>, window_params = [{transform_indices = @transform_0, window_bounds = array<i64: 8, 32>}, {transform_indices = @transform_1, window_bounds = array<i64: 1, 32>}, {transform_indices = @transform_2, window_bounds = array<i64: 1>}, {transform_indices = @transform_3, window_bounds = array<i64: 1, 8>}]} {
    %c0_i32 = arith.constant 0 : i32
    %0 = arith.cmpi eq, %arg1, %c0_i32 : i32
    %1 = arith.extui %0 : i1 to i32
    %c0_i32_0 = arith.constant 0 : i32
    %2 = arith.cmpi ne, %1, %c0_i32_0 : i32
    scf.if %2 {
      %cst_10 = arith.constant 0.000000e+00 : f32
      %12 = vector.broadcast %cst_10 : f32 to vector<1x8xf32>
      %c0_11 = arith.constant 0 : index
      %c0_12 = arith.constant 0 : index
      %13 = vector.load %arg6[%c0_11, %c0_12] : memref<1x8xf32, #tpu.memory_space<vmem>>, vector<1x8xf32>
      tpu.vector_store %arg6[%c0_11, %c0_12], %12 {strides = array<i32>} : memref<1x8xf32, #tpu.memory_space<vmem>>, vector<1x8xf32>,
    } else {
    }
    %c0 = arith.constant 0 : index
    %c0_1 = arith.constant 0 : index
    %3 = vector.load %arg3[%c0, %c0_1] : memref<1x32xf32, #tpu.memory_space<vmem>>, vector<1x32xf32>
    %c0_2 = arith.constant 0 : index
    %c0_3 = arith.constant 0 : index
    %4 = vector.load %arg2[%c0_2, %c0_3] : memref<8x32xf32, #tpu.memory_space<vmem>>, vector<8x32xf32>
    %cst = arith.constant dense<0.000000e+00> : vector<1x8xf32>
    %5 = tpu.matmul %3, %4, %cst {dimension_numbers = #tpu.dot_dimension_numbers<[1], [1], [0], [0], [0, 0, 1, 0], [], []>} : vector<1x32xf32>, vector<8x32xf32>, vector<1x8xf32> -> vector<1x8xf32>
    %c0_4 = arith.constant 0 : index
    %c0_5 = arith.constant 0 : index
    %6 = vector.load %arg6[%c0_4, %c0_5] : memref<1x8xf32, #tpu.memory_space<vmem>>, vector<1x8xf32>
    %7 = arith.addf %6, %5 : vector<1x8xf32>
    %c0_6 = arith.constant 0 : index
    %c0_7 = arith.constant 0 : index
    %8 = vector.load %arg6[%c0_6, %c0_7] : memref<1x8xf32, #tpu.memory_space<vmem>>, vector<1x8xf32>
    tpu.vector_store %arg6[%c0_6, %c0_7], %7 {strides = array<i32>} : memref<1x8xf32, #tpu.memory_space<vmem>>, vector<1x8xf32>,
    %c0_i32_8 = arith.constant 0 : i32
    %9 = arith.cmpi eq, %arg1, %c0_i32_8 : i32
    %10 = arith.extui %9 : i1 to i32
    %c0_i32_9 = arith.constant 0 : i32
    %11 = arith.cmpi ne, %10, %c0_i32_9 : i32
    scf.if %11 {
      %c0_10 = arith.constant 0 : index
      %c0_11 = arith.constant 0 : index
      %12 = vector.load %arg6[%c0_10, %c0_11] : memref<1x8xf32, #tpu.memory_space<vmem>>, vector<1x8xf32>
      %c0_12 = arith.constant 0 : index
      %13 = memref.load %arg4[%c0_12] : memref<1xf32, #tpu.memory_space<smem>>
      %14 = vector.broadcast %13 : f32 to vector<1x8xf32>
      %15 = arith.addf %12, %14 : vector<1x8xf32>
      %c0_13 = arith.constant 0 : index
      %c0_14 = arith.constant 0 : index
      %16 = vector.load %arg5[%c0_13, %c0_14] : memref<1x8xf32, #tpu.memory_space<vmem>>, vector<1x8xf32>
      tpu.vector_store %arg5[%c0_13, %c0_14], %15 {strides = array<i32>} : memref<1x8xf32, #tpu.memory_space<vmem>>, vector<1x8xf32>,
    } else {
    }
    return
  }
  func.func @transform_0(%arg0: i32, %arg1: i32) -> (i32, i32) {
    %c0_i32 = arith.constant 0 : i32
    return %arg0, %arg1 : i32, i32
  }
  func.func @transform_1(%arg0: i32, %arg1: i32) -> (i32, i32) {
    %c0_i32 = arith.constant 0 : i32
    %c0_i32_0 = arith.constant 0 : i32
    return %c0_i32, %arg1 : i32, i32
  }
  func.func @transform_2(%arg0: i32, %arg1: i32) -> i32 {
    %c0_i32 = arith.constant 0 : i32
    %c0_i32_0 = arith.constant 0 : i32
    return %c0_i32 : i32
  }
  func.func @transform_3(%arg0: i32, %arg1: i32) -> (i32, i32) {
    %c0_i32 = arith.constant 0 : i32
    %c0_i32_0 = arith.constant 0 : i32
    return %c0_i32, %arg0 : i32, i32
  }
}

</mosaic_0001>

<bundles_post_ra>
// kernel: tpu_custom_call.1
= control target key start
LH: loop header
LB: loop body
LE: loop exit
PB: predicated region body
PF: predicated region fallthrough
CT: control target
= control target key end

     0   :  { %9 = vsyncpa [#allocation5], 0  ;;  %s236_s0 = inlined_call_operand.hbm [shape: f32[8,32], index: 0, kind: input, shape index: {}]   ;;  %s237_s1 = inlined_call_operand.vmem [shape: f32[1,32], index: 1, kind: input, shape index: {}]   ;;  %s238_s2 = inlined_call_operand.<no memory space> [shape: f32[1], index: 2, kind: input, shape index: {}]   ;;  %s239_s3 = inlined_call_operand.hbm [shape: f32[1,8], index: 3, kind: output, shape index: {}]  }
   0x1   :  { %10 = vsyncpa [#allocation6], 0  ;;  %s197_s12 = smov [#allocation4]  }
   0x2   :  { %s17_s13 = sshll.u32 %s197_s12, 4  ;;  %s18_s13 = int_to_ptr.vmem [resolvable:$true] %s17_s13 }
   0x3   :  { %s161_s14 = scalar_lea.vmem %s18_s13, 128  ;;  %p166_p1 = scmp.lt.s32.totalorder %s18_s13, %s18_s13 }
   0x4   :  { %p162_p0 = scmp.ne.s32.totalorder %s18_s13, %s161_s14  ;;  %p167_p2 = scmp.lt.s32.totalorder %s161_s14, %s161_s14 }
   0x6   :  { %p168_p3 = por %p167_p2, %p166_p1 }
   0x8   :  { %p169_p4 = pnand %p168_p3, %p162_p0 }
   0xa   :  { %172 = shalt.err (!%p169_p4)
}
   0xb   :  { %20 = dma.hbm_to_vmem [thread:$0]  %s236_s0, 128, %s18_s13, [#allocation5]  }
   0xc   :  { %193 = dma.done.wait [#allocation5], 128  }
   0xd   :  { %194 = vsyncadd [#allocation5], 4294967168  ;;  %vm32_vm0 = vcmask 57344   ;;  %v198_v0 = vmov 0.0   ;;  %vm199_vm1 = vmmov 0   ;;  %vm36_vm2 = vcmask 261120  }
   0xe   :  { %33 = vst.msk [vmem:[#allocation2] sm:$0x1] %vm32_vm0, %v198_v0  ;;  %144 = vmatprep.subr.mxu0 %v198_v0  ;;  %146 = vmatprep.mubr.msk.f32.mxu0 %vm199_vm1, %v198_v0  ;;  %v35_v1 = vld [vmem:[#allocation4] sm:$0xff]  ;;  %v34_v2 = vld [vmem:[%s237_s1] sm:$0x1]  ;;  %v122_v7 = vstv %s238_s2  ;;  %s200_s20 = smov [#allocation7]  }
   0xf   :  { %145 = vmatpush3.xpose.msk.msra.mxu0 %vm36_vm2, %v35_v1  ;;  %s131_s21 = sshll.u32 %s200_s20, 4  ;;  %s132_s21 = int_to_ptr.vmem [resolvable:$true] %s131_s21 }
  0x10   :  { %s173_s22 = scalar_lea.vmem %s132_s21, 16  ;;  %s177_s1 = scalar_lea.vmem %s132_s21, 32 }
  0x11   :  { %p174_p5 = scmp.ne.s32.totalorder %s132_s21, %s173_s22  ;;  %p178_p6 = scmp.lt.s32.totalorder %s132_s21, %s132_s21 }
  0x12   :  { %147 = vmatmul.mubr.msk.f32.vlgmr.msra.gmra.mxu0 %vm36_vm2, %v34_v2  ;;  %p179_p7 = scmp.lt.s32.totalorder %s177_s1, %s173_s22 }
  0x14   :  { %p180_p8 = por %p179_p7, %p178_p6 }
  0x15   :  { %v113_v3 = vld [vmem:[#allocation2] sm:$0x1] }
  0x16   :  { %p181_p9 = pnand %p180_p8, %p174_p5 }
  0xd2   :  { %v109_v4 = vpop.f32.mrf.mxu0 }
  0xd3   :  { %v114_v5 = vadd.f32 %v113_v3, %v109_v4 }
  0xd4   :  { %v148_v6 = vpop.f32.mrf.mxu0 }
  0xd5   :  { %116 = vst.msk [vmem:[#allocation2] sm:$0x1] %vm32_vm0, %v114_v5 }
  0xdc   :  { %v120_v8 = vld [vmem:[#allocation2] sm:$0x1] }
  0xdd   :  { %v123_v9 = vadd.f32 %v122_v7, %v120_v8 }
  0xdf   :  { %124 = vst.msk [vmem:[#allocation7] sm:$0x1] %vm32_vm0, %v123_v9 }
  0xe0   :  { %184 = shalt.err (!%p181_p9)
}
  0xe1   :  { %134 = dma.vmem_to_hbm [thread:$0]  %s132_s21, 16, %s239_s3, [#allocation6]  }
  0xe2   :  { %195 = dma.done.wait [#allocation6], 16  }
  0xe3   :  { %196 = vsyncadd [#allocation6], 4294967280 }
  0xe4   :  { %138 = vsyncpa [#allocation5], 1 }
  0xe5   :  { %139 = vsyncpa [#allocation6], 1 }

</bundles_post_ra>
